<compile_context>
chip_gen: v7x
topology: tpu7x:2x2x1
jax: 0.10.0
libtpu: 0.0.40
codegen_flags: <defaults>
</compile_context>

<pallas_src>
import math

import jax
import jax.numpy as jnp
from jax.experimental import pallas as pl
from jax.experimental.pallas import tpu as pltpu


def _round_up(x, m):
    return ((x + m - 1) // m) * m


def _vmem_budget_bytes():
    """~75% of this chip's VMEM (96 MiB on v5e/v6e, 48 MiB on v7x / fallback)."""
    cap = 64 << 20  # conservative default: v7x per-TC VMEM
    try:
        info = pltpu.get_tpu_info()
        cap = int(getattr(info, "vmem_capacity_bytes", cap))
    except Exception:
        pass
    return (cap * 3) // 4


# ----------------------------- kernels -------------------------------------


def _mm_kernel_2d(a_ref, b_ref, o_ref):
    """One (tm, tn) output tile of h @ h.T; D fits in a single K step."""
    o_ref[...] = jnp.dot(
        a_ref[...], b_ref[...], preferred_element_type=jnp.float32
    ).astype(o_ref.dtype)


def _mm_kernel_3d_acc_in_out(a_ref, b_ref, o_ref):
    """K-tiled variant, f32 output: accumulate directly into the resident o_ref.

    NOTE: correct only because the output index_map ignores k AND k is the
    innermost grid axis (output block stays resident across the K sweep).
    Do not reorder the grid or change the out index_map without revisiting this.
    """
    k = pl.program_id(2)

    @pl.when(k == 0)
    def _():
        o_ref[...] = jnp.zeros_like(o_ref)

    o_ref[...] += jnp.dot(a_ref[...], b_ref[...], preferred_element_type=jnp.float32)


def _mm_kernel_3d_scratch(a_ref, b_ref, o_ref, acc_ref):
    """K-tiled variant, non-f32 output: f32 VMEM accumulator, cast at the end."""
    k = pl.program_id(2)

    @pl.when(k == 0)
    def _():
        acc_ref[...] = jnp.zeros_like(acc_ref)

    acc_ref[...] += jnp.dot(a_ref[...], b_ref[...], preferred_element_type=jnp.float32)

    @pl.when(k == pl.num_programs(2) - 1)
    def _():
        o_ref[...] = acc_ref[...].astype(o_ref.dtype)


# ----------------------------- tile selection --------------------------------


def _vmem_usage(tm, tn, tk, in_b, out_b, with_acc):
    a = 2 * tm * tk * in_b        # double-buffered A tile
    b = 2 * tk * tn * in_b        # double-buffered B (h.T) tile
    o = 2 * tm * tn * out_b       # double-buffered output tile
    acc = tm * tn * 4 if with_acc else 0
    return a + b + o + acc


def _select_tiles(N, Dp, in_b, out_b, budget, tm_user, tn_user):
    """Pick (tm, tn, Np).  tm is the B re-streaming lever; tn stays lane-dense."""
    Np256 = _round_up(max(N, 1), 256)
    tk_probe = min(Dp, 2048)

    if tm_user is not None:
        tm_cands = [max(256, _round_up(int(tm_user), 256))]
    else:
        tm_cands = [t for t in (2048, 1024, 512, 256) if t <= Np256] or [256]
    if tn_user is not None:
        tn_cands = [max(256, _round_up(int(tn_user), 256))]
    else:
        tn_cands = [t for t in (512, 256) if t <= Np256] or [256]

    choices = []
    for tm in tm_cands:
        for tn in tn_cands:
            Np = _round_up(N, math.lcm(tm, tn))
            pad_ok = (Np - Np256) <= Np256 // 8          # keep padded area in check
            fits = _vmem_usage(tm, tn, tk_probe, in_b, out_b, True) <= budget
            choices.append((pad_ok and fits, tm, tn, Np))

    good = [c for c in choices if c[0]]
    if good:
        _, tm, tn, Np = max(good, key=lambda c: (c[1], c[2]))   # biggest tm, then tn
    elif tm_user is not None or tn_user is not None:
        _, tm, tn, Np = choices[0]                              # honor explicit override
    else:
        tm = tn = 256
        Np = _round_up(N, 256)
    return tm, tn, Np


# ----------------------------- wrapper --------------------------------------


def reconstruct(h, *, tm=None, tn=None, bf16_inputs=False, out_dtype=None):
    """Pallas equivalent of torch.mm(h, h.transpose(1, 0))."""
    N, D = h.shape
    out_dtype = jnp.dtype(out_dtype) if out_dtype is not None else jnp.dtype(h.dtype)

    in_dtype = jnp.dtype(jnp.bfloat16) if bf16_inputs else jnp.dtype(h.dtype)
    in_b = in_dtype.itemsize
    out_b = out_dtype.itemsize

    budget = _vmem_budget_bytes()
    Dp = _round_up(D, 128)

    tm, tn, Np = _select_tiles(N, Dp, in_b, out_b, budget, tm, tn)
    grid_m, grid_n = Np // tm, Np // tn

    # ---- K tiling: prefer a single K step (2-D grid, no accumulator) --------
    fixed_out = 2 * tm * tn * out_b
    per_k = 2 * (tm + tn) * in_b
    tk_fit = max(128, ((budget - fixed_out) // per_k) // 128 * 128)
    if tk_fit >= Dp:
        tk, k_steps = Dp, 1
        acc_in_out = False
    else:
        acc_in_out = out_dtype == jnp.dtype(jnp.float32)
        if not acc_in_out:                       # leave room for the f32 accumulator
            fixed = fixed_out + tm * tn * 4
            tk_fit = max(128, ((budget - fixed) // per_k) // 128 * 128)
        tk = tk_fit
        k_steps = -(-Dp // tk)
        Dp = k_steps * tk                        # pad K to a multiple of tk

    # ---- pad (zeros do not change h @ h.T on the valid region) --------------
    hp = h
    if bf16_inputs and hp.dtype != jnp.bfloat16:
        hp = hp.astype(jnp.bfloat16)
    if (Np, Dp) != (N, D):
        hp = jnp.pad(hp, ((0, Np - N), (0, Dp - D)))
    # One-time HBM transpose of the RHS: the kernel then runs a standard
    # [tm,tk] @ [tk,tn] matmul with no per-tile XLU transpose.
    hp_t = hp.T

    # ---- advisory cost: include B re-streaming -------------------------------
    if k_steps == 1:
        a_stream = Np * Dp                  # A fetched once per i-row of blocks
        b_stream = grid_m * Np * Dp         # B re-streamed for every i
    else:
        a_stream = grid_n * Np * Dp         # residency lost: block index depends on k
        b_stream = grid_m * Np * Dp
    cost = pl.CostEstimate(
        flops=2 * Np * Np * Dp,
        transcendentals=0,
        bytes_accessed=(a_stream + b_stream) * in_b + Np * Np * out_b,
    )

    if k_steps == 1:
        # ---- fast path: no K axis, no accumulator, both axes parallel -------
        out = pl.pallas_call(
            _mm_kernel_2d,
            out_shape=jax.ShapeDtypeStruct((Np, Np), out_dtype),
            grid_spec=pltpu.PrefetchScalarGridSpec(
                num_scalar_prefetch=0,
                grid=(grid_m, grid_n),              # j innermost: A tile resident per i
                in_specs=[
                    pl.BlockSpec((tm, tk), lambda i, j: (i, 0)),   # A = h     [Np, Dp]
                    pl.BlockSpec((tk, tn), lambda i, j: (0, j)),   # B = h.T   [Dp, Np]
                ],
                out_specs=pl.BlockSpec((tm, tn), lambda i, j: (i, j)),
            ),
            compiler_params=pltpu.CompilerParams(
                dimension_semantics=("parallel", "parallel"),
                vmem_limit_bytes=budget,
            ),
            cost_estimate=cost,
        )(hp, hp_t)
    else:
        # ---- K-tiled path (very large D) -------------------------------------
        kernel = _mm_kernel_3d_acc_in_out if acc_in_out else _mm_kernel_3d_scratch
        scratch = [] if acc_in_out else [pltpu.VMEM((tm, tn), jnp.float32)]
        out = pl.pallas_call(
            kernel,
            out_shape=jax.ShapeDtypeStruct((Np, Np), out_dtype),
            grid_spec=pltpu.PrefetchScalarGridSpec(
                num_scalar_prefetch=0,
                grid=(grid_m, grid_n, k_steps),     # reduction axis LAST (do not reorder)
                in_specs=[
                    pl.BlockSpec((tm, tk), lambda i, j, k: (i, k)),
                    pl.BlockSpec((tk, tn), lambda i, j, k: (k, j)),
                ],
                out_specs=pl.BlockSpec((tm, tn), lambda i, j, k: (i, j)),
                scratch_shapes=scratch,
            ),
            compiler_params=pltpu.CompilerParams(
                dimension_semantics=("parallel", "parallel", "arbitrary"),
                vmem_limit_bytes=budget,
            ),
            cost_estimate=cost,
        )(hp, hp_t)

    if Np != N:
        out = out[:N, :N]
    return out


# ----------------------------- self test ------------------------------------

if __name__ == "__main__":
    key = jax.random.PRNGKey(0)

    # Case 1: small, tile-aligned graph embedding (N=256 nodes, D=128 dims).
    N, D = 256, 128
    h = jax.random.normal(key, (N, D), dtype=jnp.float32)
    out = jax.block_until_ready(reconstruct(h))
    ref = h @ h.T
    assert out.shape == (N, N)
    assert jnp.allclose(out, ref, atol=1e-3, rtol=1e-3), "mismatch vs reference (aligned)"

    # Case 2: ragged shapes exercising the zero-padding path.
    N2, D2 = 200, 96
    h2 = jax.random.normal(jax.random.PRNGKey(1), (N2, D2), dtype=jnp.float32)
    out2 = jax.block_until_ready(reconstruct(h2))
    ref2 = h2 @ h2.T
    assert out2.shape == (N2, N2)
    assert jnp.allclose(out2, ref2, atol=1e-3, rtol=1e-3), "mismatch vs reference (padded)"

    print("KERNEL_OK")
</pallas_src>

<mosaic_0001>
module attributes {stable_mosaic.version = 11 : i64} {
  func.func @_mm_kernel_2d(%arg0: i32, %arg1: i32, %arg2: memref<256x128xf32, #tpu.memory_space<vmem>>, %arg3: memref<128x256xf32, #tpu.memory_space<vmem>>, %arg4: memref<256x256xf32, #tpu.memory_space<vmem>>) attributes {dimension_semantics = [#tpu.dimension_semantics<parallel>, #tpu.dimension_semantics<parallel>], iteration_bounds = array<i64: 1, 1>, scalar_prefetch = 0 : i64, scratch_operands = 0 : i64, tpu.core_type = #tpu.core_type<tc>, window_params = [{transform_indices = @transform_0, window_bounds = array<i64: 256, 128>}, {transform_indices = @transform_1, window_bounds = array<i64: 128, 256>}, {transform_indices = @transform_2, window_bounds = array<i64: 256, 256>}]} {
    %c0 = arith.constant 0 : index
    %c0_0 = arith.constant 0 : index
    %0 = vector.load %arg2[%c0, %c0_0] : memref<256x128xf32, #tpu.memory_space<vmem>>, vector<256x128xf32>
    %c0_1 = arith.constant 0 : index
    %c0_2 = arith.constant 0 : index
    %1 = vector.load %arg3[%c0_1, %c0_2] : memref<128x256xf32, #tpu.memory_space<vmem>>, vector<128x256xf32>
    %cst = arith.constant dense<0.000000e+00> : vector<256x256xf32>
    %2 = tpu.matmul %0, %1, %cst {dimension_numbers = #tpu.dot_dimension_numbers<[1], [0], [0], [1], [0, 0, 1, 1], [], []>} : vector<256x128xf32>, vector<128x256xf32>, vector<256x256xf32> -> vector<256x256xf32>
    %c0_3 = arith.constant 0 : index
    %c0_4 = arith.constant 0 : index
    %3 = vector.load %arg4[%c0_3, %c0_4] : memref<256x256xf32, #tpu.memory_space<vmem>>, vector<256x256xf32>
    tpu.vector_store %arg4[%c0_3, %c0_4], %2 {strides = array<i32>} : memref<256x256xf32, #tpu.memory_space<vmem>>, vector<256x256xf32>,
    return
  }
  func.func @transform_0(%arg0: i32, %arg1: i32) -> (i32, i32) {
    %c0_i32 = arith.constant 0 : i32
    %c0_i32_0 = arith.constant 0 : i32
    return %arg0, %c0_i32 : i32, i32
  }
  func.func @transform_1(%arg0: i32, %arg1: i32) -> (i32, i32) {
    %c0_i32 = arith.constant 0 : i32
    %c0_i32_0 = arith.constant 0 : i32
    return %c0_i32, %arg1 : i32, i32
  }
  func.func @transform_2(%arg0: i32, %arg1: i32) -> (i32, i32) {
    %c0_i32 = arith.constant 0 : i32
    return %arg0, %arg1 : i32, i32
  }
}

</mosaic_0001>

<bundles_post_ra>
// kernel: tpu_custom_call.1
= control target key start
LH: loop header
LB: loop body
LE: loop exit
PB: predicated region body
PF: predicated region fallthrough
CT: control target
= control target key end

     0   :  { %7 = vsyncpa [#allocation3], 0  ;;  %s668_s0 = inlined_call_operand.hbm [shape: f32[256,128], index: 0, kind: input, shape index: {}]   ;;  %s669_s1 = inlined_call_operand.hbm [shape: f32[128,256], index: 1, kind: input, shape index: {}]   ;;  %s670_s2 = inlined_call_operand.hbm [shape: f32[256,256], index: 2, kind: output, shape index: {}]  }
   0x1   :  { %8 = vsyncpa [#allocation6], 0 }
   0x2   :  { %9 = vsyncpa [#allocation4], 0  ;;  %s571_s9 = smov [#allocation2]   ;;  %s499_s13 = scalar_lea.hbm %s668_s0, 4096 }
   0x3   :  { %s15_s10 = sshll.u32 %s571_s9, 4  ;;  %p500_p0 = scmp.ne.s32.totalorder %s668_s0, %s499_s13  ;;  %s16_s10 = int_to_ptr.vmem [resolvable:$true] %s15_s10 }
   0x4   :  { %p503_p1 = scmp.lt.u32.totalorder %s499_s13, %s668_s0 }
   0x6   :  { %p505_p2 = pnand %p503_p1, %p500_p0 }
   0x8   :  { %508 = shalt.err (!%p505_p2)
}
   0x9   :  { %s509_s18 = scalar_lea.vmem %s16_s10, 4096  ;;  %p514_p4 = scmp.lt.s32.totalorder %s16_s10, %s16_s10 }
   0xa   :  { %p510_p3 = scmp.ne.s32.totalorder %s16_s10, %s509_s18  ;;  %p515_p5 = scmp.lt.s32.totalorder %s509_s18, %s509_s18 }
   0xc   :  { %p516_p6 = por %p515_p5, %p514_p4 }
   0xe   :  { %p517_p7 = pnand %p516_p6, %p510_p3 }
  0x10   :  { %520 = shalt.err (!%p517_p7)
}
  0x11   :  { %s572_s19 = smov 128   ;;  %s573_s20 = smov 8  }
  0x12   :  { %21 = dma.hbm_to_vmem [thread:$0]  %s668_s0, 4096, %s16_s10, [#allocation3], %s572_s19, %s572_s19, %s573_s20  }
  0x13   :  { %s574_s23 = smov [#allocation5]   ;;  %s521_s27 = scalar_lea.hbm %s669_s1, 4096 }
  0x14   :  { %s27_s24 = sshll.u32 %s574_s23, 4  ;;  %p522_p8 = scmp.ne.s32.totalorder %s669_s1, %s521_s27  ;;  %s28_s24 = int_to_ptr.vmem [resolvable:$true] %s27_s24 }
  0x15   :  { %p525_p9 = scmp.lt.u32.totalorder %s521_s27, %s669_s1 }
  0x17   :  { %p527_p10 = pnand %p525_p9, %p522_p8 }
  0x19   :  { %530 = shalt.err (!%p527_p10)
}
  0x1a   :  { %s531_s4 = scalar_lea.vmem %s28_s24, 4096  ;;  %p536_p12 = scmp.lt.s32.totalorder %s28_s24, %s28_s24 }
  0x1b   :  { %p532_p11 = scmp.ne.s32.totalorder %s28_s24, %s531_s4  ;;  %p537_p13 = scmp.lt.s32.totalorder %s531_s4, %s531_s4 }
  0x1d   :  { %p538_p0 = por %p537_p13, %p536_p12 }
  0x1f   :  { %p539_p1 = pnand %p538_p0, %p532_p11 }
  0x21   :  { %542 = shalt.err (!%p539_p1)
}
  0x22   :  { %s575_s0 = smov 256   ;;  %s576_s5 = smov 16  }
  0x23   :  { %33 = dma.hbm_to_vmem [thread:$0]  %s669_s1, 4096, %s28_s24, [#allocation6], %s575_s0, %s575_s0, %s576_s5  }
  0x24   :  { %565 = dma.done.wait [#allocation3], 4096  }
  0x25   :  { %566 = vsyncadd [#allocation3], 4294963200 }
  0x26   :  { %567 = dma.done.wait [#allocation6], 4096  }
  0x27   :  { %568 = vsyncadd [#allocation6], 4294963200  ;;  %v577_v0 = vmov 0.0   ;;  %v73_v1 = vld [vmem:[#allocation5 + $0x8] sm:$0xff]  ;;  %v75_v2 = vld [vmem:[#allocation5 + $0x18] sm:$0xff]  ;;  %s578_s1 = smov [#allocation7]  }
  0x28   :  { %168 = vmatprep.mubr.f32.mxu0 %v577_v0  ;;  %264 = vmatprep.mubr.f32.mxu1 %v577_v0  ;;  %v72_v3 = vld [vmem:[#allocation5] sm:$0xff]  ;;  %v443_v4 = vpack.c.bf16 %v75_v2, %v73_v1  ;;  %v74_v5 = vld [vmem:[#allocation5 + $0x10] sm:$0xff]  ;;  %v77_v6 = vld [vmem:[#allocation5 + $0x28] sm:$0xff]  ;;  %s430_s8 = sshll.u32 %s578_s1, 4  ;;  %s431_s8 = int_to_ptr.vmem [resolvable:$true] %s430_s8 }
  0x29   :  { %v79_v7 = vld [vmem:[#allocation5 + $0x38] sm:$0xff]  ;;  %v445_v8 = vpack.c.bf16 %v74_v5, %v72_v3  ;;  %v76_v10 = vld [vmem:[#allocation5 + $0x20] sm:$0xff]  ;;  %v78_v11 = vld [vmem:[#allocation5 + $0x30] sm:$0xff]  ;;  %s543_s9 = scalar_lea.vmem %s431_s8, 8192  ;;  %p548_p3 = scmp.lt.s32.totalorder %s431_s8, %s431_s8 }
  0x2a   :  { %v447_v9 = vpack.c.bf16 %v79_v7, %v77_v6  ;;  %v81_v12 = vld [vmem:[#allocation5 + $0x48] sm:$0xff]  ;;  %444 = vmatprep.subr.bf16.mxu0 %v443_v4  ;;  %475 = vmatprep.subr.bf16.mxu1 %v443_v4  ;;  %v83_v13 = vld [vmem:[#allocation5 + $0x58] sm:$0xff]  ;;  %v449_v14 = vpack.c.bf16 %v78_v11, %v76_v10  ;;  %v80_v16 = vld [vmem:[#allocation5 + $0x40] sm:$0xff]  ;;  %p544_p2 = scmp.ne.s32.totalorder %s431_s8, %s543_s9  ;;  %p549_p4 = scmp.lt.s32.totalorder %s543_s9, %s543_s9 }
  0x2b   :  { %446 = vmatpush1.bf16.msra.mxu0 %v445_v8  ;;  %483 = vmatpush1.bf16.msra.mxu1 %v445_v8  ;;  %v451_v15 = vpack.c.bf16 %v83_v13, %v81_v12  ;;  %v82_v17 = vld [vmem:[#allocation5 + $0x50] sm:$0xff]  ;;  %v85_v18 = vld [vmem:[#allocation5 + $0x68] sm:$0xff]  ;;  %v87_v19 = vld [vmem:[#allocation5 + $0x78] sm:$0xff] }
  0x2c   :  { %448 = vmatprep.subr.bf16.mxu0 %v447_v9  ;;  %476 = vmatprep.subr.bf16.mxu1 %v447_v9  ;;  %v453_v20 = vpack.c.bf16 %v82_v17, %v80_v16  ;;  %v455_v21 = vpack.c.bf16 %v87_v19, %v85_v18  ;;  %v84_v22 = vld [vmem:[#allocation5 + $0x60] sm:$0xff]  ;;  %v86_v23 = vld [vmem:[#allocation5 + $0x70] sm:$0xff]  ;;  %v89_v24 = vld [vmem:[#allocation5 + $0x88] sm:$0xff]  ;;  %p550_p5 = por %p549_p4, %p548_p3 }
  0x2d   :  { %v91_v25 = vld [vmem:[#allocation5 + $0x98] sm:$0xff]  ;;  %v457_v26 = vpack.c.bf16 %v86_v23, %v84_v22  ;;  %v88_v28 = vld [vmem:[#allocation5 + $0x80] sm:$0xff]  ;;  %v90_v29 = vld [vmem:[#allocation5 + $0x90] sm:$0xff] }
  0x2e   :  { %v459_v27 = vpack.c.bf16 %v91_v25, %v89_v24  ;;  %v93_v30 = vld [vmem:[#allocation5 + $0xa8] sm:$0xff]  ;;  %v95_v31 = vld [vmem:[#allocation5 + $0xb8] sm:$0xff]  ;;  %v461_v32 = vpack.c.bf16 %v90_v29, %v88_v28  ;;  %v92_v34 = vld [vmem:[#allocation5 + $0xa0] sm:$0xff]  ;;  %p551_p6 = pnand %p550_p5, %p544_p2 }
  0x2f   :  { %450 = vmatpush1.bf16.msra.mxu0 %v449_v14  ;;  %484 = vmatpush1.bf16.msra.mxu1 %v449_v14  ;;  %v463_v33 = vpack.c.bf16 %v95_v31, %v93_v30  ;;  %v94_v35 = vld [vmem:[#allocation5 + $0xb0] sm:$0xff]  ;;  %v97_v36 = vld [vmem:[#allocation5 + $0xc8] sm:$0xff]  ;;  %v99_v37 = vld [vmem:[#allocation5 + $0xd8] sm:$0xff] }
  0x30   :  { %452 = vmatprep.subr.bf16.mxu0 %v451_v15  ;;  %477 = vmatprep.subr.bf16.mxu1 %v451_v15  ;;  %v465_v38 = vpack.c.bf16 %v94_v35, %v92_v34  ;;  %v467_v39 = vpack.c.bf16 %v99_v37, %v97_v36  ;;  %v96_v40 = vld [vmem:[#allocation5 + $0xc0] sm:$0xff]  ;;  %v98_v41 = vld [vmem:[#allocation5 + $0xd0] sm:$0xff]  ;;  %v101_v42 = vld [vmem:[#allocation5 + $0xe8] sm:$0xff] }
  0x31   :  { %v103_v43 = vld [vmem:[#allocation5 + $0xf8] sm:$0xff]  ;;  %v469_v44 = vpack.c.bf16 %v98_v41, %v96_v40  ;;  %v100_v46 = vld [vmem:[#allocation5 + $0xe0] sm:$0xff]  ;;  %v102_v47 = vld [vmem:[#allocation5 + $0xf0] sm:$0xff] }
  0x32   :  { %v471_v45 = vpack.c.bf16 %v103_v43, %v101_v42  ;;  %v473_v48 = vpack.c.bf16 %v102_v47, %v100_v46  ;;  %v40_v49 = vld [vmem:[#allocation2] sm:$0xff]  ;;  %v41_v51 = vld [vmem:[#allocation2 + $0x8] sm:$0xff]  ;;  %v42_v53 = vld [vmem:[#allocation2 + $0x10] sm:$0xff] }
  0x33   :  { %454 = vmatpush1.bf16.msra.mxu0 %v453_v20  ;;  %485 = vmatpush1.bf16.msra.mxu1 %v453_v20  ;;  %v56_v50 = vld [vmem:[#allocation2 + $0x80] sm:$0xff]  ;;  %v57_v52 = vld [vmem:[#allocation2 + $0x88] sm:$0xff]  ;;  %v58_v54 = vld [vmem:[#allocation2 + $0x90] sm:$0xff] }
  0x34   :  { %456 = vmatprep.subr.bf16.mxu0 %v455_v21  ;;  %478 = vmatprep.subr.bf16.mxu1 %v455_v21  ;;  %v43_v55 = vld [vmem:[#allocation2 + $0x18] sm:$0xff]  ;;  %v44_v57 = vld [vmem:[#allocation2 + $0x20] sm:$0xff]  ;;  %v45_v59 = vld [vmem:[#allocation2 + $0x28] sm:$0xff] }
  0x35   :  { %v59_v56 = vld [vmem:[#allocation2 + $0x98] sm:$0xff]  ;;  %v60_v58 = vld [vmem:[#allocation2 + $0xa0] sm:$0xff]  ;;  %v61_v60 = vld [vmem:[#allocation2 + $0xa8] sm:$0xff] }
  0x36   :  { %v46_v61 = vld [vmem:[#allocation2 + $0x30] sm:$0xff]  ;;  %v47_v63 = vld [vmem:[#allocation2 + $0x38] sm:$0xff]  ;;  %v48_v2 = vld [vmem:[#allocation2 + $0x40] sm:$0xff] }
  0x37   :  { %458 = vmatpush1.bf16.msra.mxu0 %v457_v26  ;;  %486 = vmatpush1.bf16.msra.mxu1 %v457_v26  ;;  %v62_v62 = vld [vmem:[#allocation2 + $0xb0] sm:$0xff]  ;;  %v63_v1 = vld [vmem:[#allocation2 + $0xb8] sm:$0xff]  ;;  %v64_v3 = vld [vmem:[#allocation2 + $0xc0] sm:$0xff] }
  0x38   :  { %460 = vmatprep.subr.bf16.mxu0 %v459_v27  ;;  %479 = vmatprep.subr.bf16.mxu1 %v459_v27  ;;  %v49_v4 = vld [vmem:[#allocation2 + $0x48] sm:$0xff]  ;;  %v50_v6 = vld [vmem:[#allocation2 + $0x50] sm:$0xff]  ;;  %v51_v8 = vld [vmem:[#allocation2 + $0x58] sm:$0xff] }
  0x39   :  { %v65_v5 = vld [vmem:[#allocation2 + $0xc8] sm:$0xff]  ;;  %v66_v7 = vld [vmem:[#allocation2 + $0xd0] sm:$0xff]  ;;  %v67_v9 = vld [vmem:[#allocation2 + $0xd8] sm:$0xff] }
  0x3a   :  { %v52_v10 = vld [vmem:[#allocation2 + $0x60] sm:$0xff]  ;;  %v53_v12 = vld [vmem:[#allocation2 + $0x68] sm:$0xff]  ;;  %v54_v14 = vld [vmem:[#allocation2 + $0x70] sm:$0xff] }
  0x3b   :  { %462 = vmatpush1.bf16.msra.mxu0 %v461_v32  ;;  %487 = vmatpush1.bf16.msra.mxu1 %v461_v32  ;;  %v68_v11 = vld [vmem:[#allocation2 + $0xe0] sm:$0xff]  ;;  %v69_v13 = vld [vmem:[#allocation2 + $0xe8] sm:$0xff]  ;;  %v70_v15 = vld [vmem:[#allocation2 + $0xf0] sm:$0xff] }
  0x3c   :  { %464 = vmatprep.subr.bf16.mxu0 %v463_v33  ;;  %480 = vmatprep.subr.bf16.mxu1 %v463_v33  ;;  %v55_v16 = vld [vmem:[#allocation2 + $0x78] sm:$0xff] }
  0x3d   :  { %v71_v17 = vld [vmem:[#allocation2 + $0xf8] sm:$0xff] }
  0x3f   :  { %466 = vmatpush1.bf16.msra.mxu0 %v465_v38  ;;  %488 = vmatpush1.bf16.msra.mxu1 %v465_v38 }
  0x40   :  { %468 = vmatprep.subr.bf16.mxu0 %v467_v39  ;;  %481 = vmatprep.subr.bf16.mxu1 %v467_v39 }
  0x43   :  { %470 = vmatpush1.bf16.msra.mxu0 %v469_v44  ;;  %489 = vmatpush1.bf16.msra.mxu1 %v469_v44 }
  0x44   :  { %472 = vmatprep.subr.bf16.mxu0 %v471_v45  ;;  %482 = vmatprep.subr.bf16.mxu1 %v471_v45 }
  0x47   :  { %474 = vmatpush1.bf16.msra.mxu0 %v473_v48  ;;  %490 = vmatpush1.bf16.msra.mxu1 %v473_v48 }
  0x4a   :  { %169 = vmatmul.mubr.f32.vlgmr.msra.gmra.mrb[0].mxu0 %v40_v49  ;;  %265 = vmatmul.mubr.f32.vlgmr.msra.gmra.mrb[0].mxu1 %v56_v50 }
  0x4b   :  { %174 = vmatprep.mubr.f32.mxu0 %v577_v0  ;;  %270 = vmatprep.mubr.f32.mxu1 %v577_v0 }
  0x4e   :  { %175 = vmatmul.mubr.f32.gmra.mrb[2].mxu0 %v41_v51  ;;  %271 = vmatmul.mubr.f32.gmra.mrb[2].mxu1 %v57_v52 }
  0x4f   :  { %180 = vmatprep.mubr.f32.mxu0 %v577_v0  ;;  %276 = vmatprep.mubr.f32.mxu1 %v577_v0 }
  0x52   :  { %181 = vmatmul.mubr.f32.gmra.mrb[4].mxu0 %v42_v53  ;;  %277 = vmatmul.mubr.f32.gmra.mrb[4].mxu1 %v58_v54 }
  0x53   :  { %186 = vmatprep.mubr.f32.mxu0 %v577_v0  ;;  %282 = vmatprep.mubr.f32.mxu1 %v577_v0 }
  0x56   :  { %187 = vmatmul.mubr.f32.gmra.mrb[6].mxu0 %v43_v55  ;;  %283 = vmatmul.mubr.f32.gmra.mrb[6].mxu1 %v59_v56 }
  0x57   :  { %192 = vmatprep.mubr.f32.mxu0 %v577_v0  ;;  %288 = vmatprep.mubr.f32.mxu1 %v577_v0 }
  0x5a   :  { %193 = vmatmul.mubr.f32.gmra.mrb[8].mxu0 %v44_v57  ;;  %289 = vmatmul.mubr.f32.gmra.mrb[8].mxu1 %v60_v58 }
  0x5b   :  { %198 = vmatprep.mubr.f32.mxu0 %v577_v0  ;;  %294 = vmatprep.mubr.f32.mxu1 %v577_v0 }
  0x5e   :  { %199 = vmatmul.mubr.f32.gmra.mrb[10].mxu0 %v45_v59  ;;  %295 = vmatmul.mubr.f32.gmra.mrb[10].mxu1 %v61_v60 }
  0x5f   :  { %204 = vmatprep.mubr.f32.mxu0 %v577_v0  ;;  %300 = vmatprep.mubr.f32.mxu1 %v577_v0 }
  0x62   :  { %205 = vmatmul.mubr.f32.gmra.mrb[12].mxu0 %v46_v61  ;;  %301 = vmatmul.mubr.f32.gmra.mrb[12].mxu1 %v62_v62 }
  0x63   :  { %210 = vmatprep.mubr.f32.mxu0 %v577_v0  ;;  %306 = vmatprep.mubr.f32.mxu1 %v577_v0 }
  0x66   :  { %211 = vmatmul.mubr.f32.gmra.mrb[14].mxu0 %v47_v63  ;;  %307 = vmatmul.mubr.f32.gmra.mrb[14].mxu1 %v63_v1 }
  0x67   :  { %216 = vmatprep.mubr.f32.mxu0 %v577_v0  ;;  %312 = vmatprep.mubr.f32.mxu1 %v577_v0 }
  0x6a   :  { %217 = vmatmul.mubr.f32.gmra.mrb[16].mxu0 %v48_v2  ;;  %313 = vmatmul.mubr.f32.gmra.mrb[16].mxu1 %v64_v3 }
  0x6b   :  { %222 = vmatprep.mubr.f32.mxu0 %v577_v0  ;;  %318 = vmatprep.mubr.f32.mxu1 %v577_v0 }
  0x6e   :  { %223 = vmatmul.mubr.f32.gmra.mrb[18].mxu0 %v49_v4  ;;  %319 = vmatmul.mubr.f32.gmra.mrb[18].mxu1 %v65_v5 }
  0x6f   :  { %228 = vmatprep.mubr.f32.mxu0 %v577_v0  ;;  %324 = vmatprep.mubr.f32.mxu1 %v577_v0 }
  0x72   :  { %229 = vmatmul.mubr.f32.gmra.mrb[20].mxu0 %v50_v6  ;;  %325 = vmatmul.mubr.f32.gmra.mrb[20].mxu1 %v66_v7 }
  0x73   :  { %234 = vmatprep.mubr.f32.mxu0 %v577_v0  ;;  %330 = vmatprep.mubr.f32.mxu1 %v577_v0 }
  0x76   :  { %235 = vmatmul.mubr.f32.gmra.mrb[22].mxu0 %v51_v8  ;;  %331 = vmatmul.mubr.f32.gmra.mrb[22].mxu1 %v67_v9 }
  0x77   :  { %240 = vmatprep.mubr.f32.mxu0 %v577_v0  ;;  %336 = vmatprep.mubr.f32.mxu1 %v577_v0 }
  0x7a   :  { %241 = vmatmul.mubr.f32.gmra.mrb[24].mxu0 %v52_v10  ;;  %337 = vmatmul.mubr.f32.gmra.mrb[24].mxu1 %v68_v11 }
  0x7b   :  { %246 = vmatprep.mubr.f32.mxu0 %v577_v0  ;;  %342 = vmatprep.mubr.f32.mxu1 %v577_v0 }
  0x7e   :  { %247 = vmatmul.mubr.f32.gmra.mrb[26].mxu0 %v53_v12  ;;  %343 = vmatmul.mubr.f32.gmra.mrb[26].mxu1 %v69_v13 }
  0x7f   :  { %252 = vmatprep.mubr.f32.mxu0 %v577_v0  ;;  %348 = vmatprep.mubr.f32.mxu1 %v577_v0 }
  0x82   :  { %253 = vmatmul.mubr.f32.gmra.mrb[28].mxu0 %v54_v14  ;;  %349 = vmatmul.mubr.f32.gmra.mrb[28].mxu1 %v70_v15 }
  0x83   :  { %258 = vmatprep.mubr.f32.mxu0 %v577_v0  ;;  %354 = vmatprep.mubr.f32.mxu1 %v577_v0 }
  0x86   :  { %259 = vmatmul.mubr.f32.gmra.mrb[30].mxu0 %v55_v16  ;;  %355 = vmatmul.mubr.f32.gmra.mrb[30].mxu1 %v71_v17 }
 0x11d   :  { %v170_v18 = vpop.f32.mrb[0].mxu0  ;;  %v266_v19 = vpop.f32.mrb[0].mxu1 }
 0x11e   :  { %361 = vst [vmem:[#allocation7] sm:$0xff] %v170_v18  ;;  %393 = vst [vmem:[#allocation7 + $0x100] sm:$0xff] %v266_v19  ;;  %v172_v20 = vpop.f32.mrb[1].mxu0  ;;  %v268_v21 = vpop.f32.mrb[1].mxu1 }
 0x11f   :  { %362 = vst [vmem:[#allocation7 + $0x8] sm:$0xff] %v172_v20  ;;  %394 = vst [vmem:[#allocation7 + $0x108] sm:$0xff] %v268_v21 }
 0x121   :  { %v176_v22 = vpop.f32.mrb[2].mxu0  ;;  %v272_v23 = vpop.f32.mrb[2].mxu1 }
 0x122   :  { %363 = vst [vmem:[#allocation7 + $0x10] sm:$0xff] %v176_v22  ;;  %395 = vst [vmem:[#allocation7 + $0x110] sm:$0xff] %v272_v23  ;;  %v178_v24 = vpop.f32.mrb[3].mxu0  ;;  %v274_v25 = vpop.f32.mrb[3].mxu1 }
 0x123   :  { %364 = vst [vmem:[#allocation7 + $0x18] sm:$0xff] %v178_v24  ;;  %396 = vst [vmem:[#allocation7 + $0x118] sm:$0xff] %v274_v25 }
 0x125   :  { %v182_v0 = vpop.f32.mrb[4].mxu0  ;;  %v278_v26 = vpop.f32.mrb[4].mxu1 }
 0x126   :  { %365 = vst [vmem:[#allocation7 + $0x20] sm:$0xff] %v182_v0  ;;  %397 = vst [vmem:[#allocation7 + $0x120] sm:$0xff] %v278_v26  ;;  %v184_v27 = vpop.f32.mrb[5].mxu0  ;;  %v280_v28 = vpop.f32.mrb[5].mxu1 }
 0x127   :  { %366 = vst [vmem:[#allocation7 + $0x28] sm:$0xff] %v184_v27  ;;  %398 = vst [vmem:[#allocation7 + $0x128] sm:$0xff] %v280_v28 }
 0x129   :  { %v188_v29 = vpop.f32.mrb[6].mxu0  ;;  %v284_v30 = vpop.f32.mrb[6].mxu1 }
 0x12a   :  { %367 = vst [vmem:[#allocation7 + $0x30] sm:$0xff] %v188_v29  ;;  %399 = vst [vmem:[#allocation7 + $0x130] sm:$0xff] %v284_v30  ;;  %v190_v31 = vpop.f32.mrb[7].mxu0  ;;  %v286_v32 = vpop.f32.mrb[7].mxu1 }
 0x12b   :  { %368 = vst [vmem:[#allocation7 + $0x38] sm:$0xff] %v190_v31  ;;  %400 = vst [vmem:[#allocation7 + $0x138] sm:$0xff] %v286_v32 }
 0x12d   :  { %v194_v33 = vpop.f32.mrb[8].mxu0  ;;  %v290_v34 = vpop.f32.mrb[8].mxu1 }
 0x12e   :  { %369 = vst [vmem:[#allocation7 + $0x40] sm:$0xff] %v194_v33  ;;  %401 = vst [vmem:[#allocation7 + $0x140] sm:$0xff] %v290_v34  ;;  %v196_v35 = vpop.f32.mrb[9].mxu0  ;;  %v292_v36 = vpop.f32.mrb[9].mxu1 }
 0x12f   :  { %370 = vst [vmem:[#allocation7 + $0x48] sm:$0xff] %v196_v35  ;;  %402 = vst [vmem:[#allocation7 + $0x148] sm:$0xff] %v292_v36 }
 0x131   :  { %v200_v37 = vpop.f32.mrb[10].mxu0  ;;  %v296_v38 = vpop.f32.mrb[10].mxu1 }
 0x132   :  { %371 = vst [vmem:[#allocation7 + $0x50] sm:$0xff] %v200_v37  ;;  %403 = vst [vmem:[#allocation7 + $0x150] sm:$0xff] %v296_v38  ;;  %v202_v39 = vpop.f32.mrb[11].mxu0  ;;  %v298_v40 = vpop.f32.mrb[11].mxu1 }
 0x133   :  { %372 = vst [vmem:[#allocation7 + $0x58] sm:$0xff] %v202_v39  ;;  %404 = vst [vmem:[#allocation7 + $0x158] sm:$0xff] %v298_v40 }
 0x135   :  { %v206_v41 = vpop.f32.mrb[12].mxu0  ;;  %v302_v42 = vpop.f32.mrb[12].mxu1 }
 0x136   :  { %373 = vst [vmem:[#allocation7 + $0x60] sm:$0xff] %v206_v41  ;;  %405 = vst [vmem:[#allocation7 + $0x160] sm:$0xff] %v302_v42  ;;  %v208_v43 = vpop.f32.mrb[13].mxu0  ;;  %v304_v44 = vpop.f32.mrb[13].mxu1 }
 0x137   :  { %374 = vst [vmem:[#allocation7 + $0x68] sm:$0xff] %v208_v43  ;;  %406 = vst [vmem:[#allocation7 + $0x168] sm:$0xff] %v304_v44 }
 0x139   :  { %v212_v45 = vpop.f32.mrb[14].mxu0  ;;  %v308_v46 = vpop.f32.mrb[14].mxu1 }
 0x13a   :  { %375 = vst [vmem:[#allocation7 + $0x70] sm:$0xff] %v212_v45  ;;  %407 = vst [vmem:[#allocation7 + $0x170] sm:$0xff] %v308_v46  ;;  %v214_v47 = vpop.f32.mrb[15].mxu0  ;;  %v310_v48 = vpop.f32.mrb[15].mxu1 }
 0x13b   :  { %376 = vst [vmem:[#allocation7 + $0x78] sm:$0xff] %v214_v47  ;;  %408 = vst [vmem:[#allocation7 + $0x178] sm:$0xff] %v310_v48 }
 0x13d   :  { %v218_v49 = vpop.f32.mrb[16].mxu0  ;;  %v314_v50 = vpop.f32.mrb[16].mxu1 }
 0x13e   :  { %377 = vst [vmem:[#allocation7 + $0x80] sm:$0xff] %v218_v49  ;;  %409 = vst [vmem:[#allocation7 + $0x180] sm:$0xff] %v314_v50  ;;  %v220_v51 = vpop.f32.mrb[17].mxu0  ;;  %v316_v52 = vpop.f32.mrb[17].mxu1 }
 0x13f   :  { %378 = vst [vmem:[#allocation7 + $0x88] sm:$0xff] %v220_v51  ;;  %410 = vst [vmem:[#allocation7 + $0x188] sm:$0xff] %v316_v52 }
 0x141   :  { %v224_v53 = vpop.f32.mrb[18].mxu0  ;;  %v320_v54 = vpop.f32.mrb[18].mxu1 }
 0x142   :  { %379 = vst [vmem:[#allocation7 + $0x90] sm:$0xff] %v224_v53  ;;  %411 = vst [vmem:[#allocation7 + $0x190] sm:$0xff] %v320_v54  ;;  %v226_v55 = vpop.f32.mrb[19].mxu0  ;;  %v322_v56 = vpop.f32.mrb[19].mxu1 }
 0x143   :  { %380 = vst [vmem:[#allocation7 + $0x98] sm:$0xff] %v226_v55  ;;  %412 = vst [vmem:[#allocation7 + $0x198] sm:$0xff] %v322_v56 }
 0x145   :  { %v230_v57 = vpop.f32.mrb[20].mxu0  ;;  %v326_v58 = vpop.f32.mrb[20].mxu1 }
 0x146   :  { %381 = vst [vmem:[#allocation7 + $0xa0] sm:$0xff] %v230_v57  ;;  %413 = vst [vmem:[#allocation7 + $0x1a0] sm:$0xff] %v326_v58  ;;  %v232_v59 = vpop.f32.mrb[21].mxu0  ;;  %v328_v60 = vpop.f32.mrb[21].mxu1 }
 0x147   :  { %382 = vst [vmem:[#allocation7 + $0xa8] sm:$0xff] %v232_v59  ;;  %414 = vst [vmem:[#allocation7 + $0x1a8] sm:$0xff] %v328_v60 }
 0x149   :  { %v236_v61 = vpop.f32.mrb[22].mxu0  ;;  %v332_v62 = vpop.f32.mrb[22].mxu1 }
 0x14a   :  { %383 = vst [vmem:[#allocation7 + $0xb0] sm:$0xff] %v236_v61  ;;  %415 = vst [vmem:[#allocation7 + $0x1b0] sm:$0xff] %v332_v62  ;;  %v238_v63 = vpop.f32.mrb[23].mxu0  ;;  %v334_v1 = vpop.f32.mrb[23].mxu1 }
 0x14b   :  { %384 = vst [vmem:[#allocation7 + $0xb8] sm:$0xff] %v238_v63  ;;  %416 = vst [vmem:[#allocation7 + $0x1b8] sm:$0xff] %v334_v1 }
 0x14d   :  { %v242_v2 = vpop.f32.mrb[24].mxu0  ;;  %v338_v3 = vpop.f32.mrb[24].mxu1 }
 0x14e   :  { %385 = vst [vmem:[#allocation7 + $0xc0] sm:$0xff] %v242_v2  ;;  %417 = vst [vmem:[#allocation7 + $0x1c0] sm:$0xff] %v338_v3  ;;  %v244_v4 = vpop.f32.mrb[25].mxu0  ;;  %v340_v5 = vpop.f32.mrb[25].mxu1 }
 0x14f   :  { %386 = vst [vmem:[#allocation7 + $0xc8] sm:$0xff] %v244_v4  ;;  %418 = vst [vmem:[#allocation7 + $0x1c8] sm:$0xff] %v340_v5 }
 0x151   :  { %v248_v6 = vpop.f32.mrb[26].mxu0  ;;  %v344_v7 = vpop.f32.mrb[26].mxu1 }
 0x152   :  { %387 = vst [vmem:[#allocation7 + $0xd0] sm:$0xff] %v248_v6  ;;  %419 = vst [vmem:[#allocation7 + $0x1d0] sm:$0xff] %v344_v7  ;;  %v250_v8 = vpop.f32.mrb[27].mxu0  ;;  %v346_v9 = vpop.f32.mrb[27].mxu1 }
 0x153   :  { %388 = vst [vmem:[#allocation7 + $0xd8] sm:$0xff] %v250_v8  ;;  %420 = vst [vmem:[#allocation7 + $0x1d8] sm:$0xff] %v346_v9 }
 0x155   :  { %v254_v10 = vpop.f32.mrb[28].mxu0  ;;  %v350_v11 = vpop.f32.mrb[28].mxu1 }
 0x156   :  { %389 = vst [vmem:[#allocation7 + $0xe0] sm:$0xff] %v254_v10  ;;  %421 = vst [vmem:[#allocation7 + $0x1e0] sm:$0xff] %v350_v11  ;;  %v256_v12 = vpop.f32.mrb[29].mxu0  ;;  %v352_v13 = vpop.f32.mrb[29].mxu1 }
 0x157   :  { %390 = vst [vmem:[#allocation7 + $0xe8] sm:$0xff] %v256_v12  ;;  %422 = vst [vmem:[#allocation7 + $0x1e8] sm:$0xff] %v352_v13 }
 0x159   :  { %v260_v14 = vpop.f32.mrb[30].mxu0  ;;  %v356_v15 = vpop.f32.mrb[30].mxu1 }
 0x15a   :  { %391 = vst [vmem:[#allocation7 + $0xf0] sm:$0xff] %v260_v14  ;;  %423 = vst [vmem:[#allocation7 + $0x1f0] sm:$0xff] %v356_v15  ;;  %v262_v16 = vpop.f32.mrb[31].mxu0  ;;  %v358_v17 = vpop.f32.mrb[31].mxu1 }
 0x15b   :  { %392 = vst [vmem:[#allocation7 + $0xf8] sm:$0xff] %v262_v16  ;;  %424 = vst [vmem:[#allocation7 + $0x1f8] sm:$0xff] %v358_v17 }
 0x15c   :  { %554 = shalt.err (!%p551_p6)
}
 0x15d   :  { %s555_s12 = scalar_lea.hbm %s670_s2, 8192 }
 0x15e   :  { %p556_p7 = scmp.ne.s32.totalorder %s670_s2, %s555_s12  ;;  %p559_p8 = scmp.lt.u32.totalorder %s555_s12, %s670_s2 }
 0x160   :  { %p561_p9 = pnand %p559_p8, %p556_p7 }
 0x162   :  { %564 = shalt.err (!%p561_p9)
}
 0x163   :  { %436 = dma.vmem_to_hbm [thread:$0]  %s431_s8, 8192, %s670_s2, [#allocation4], %s575_s0, %s575_s0, %s576_s5  }
 0x164   :  { %569 = dma.done.wait [#allocation4], 8192  }
 0x165   :  { %570 = vsyncadd [#allocation4], 4294959104 }
 0x166   :  { %440 = vsyncpa [#allocation3], 1 }
 0x167   :  { %441 = vsyncpa [#allocation6], 1 }
 0x168   :  { %442 = vsyncpa [#allocation4], 1 }

</bundles_post_ra>
